<compile_context>
chip_gen: v7x
topology: tpu7x:2x2x1
jax: 0.10.0
libtpu: 0.0.40
codegen_flags: <defaults>
</compile_context>

<pallas_src>
import functools

import jax
import jax.numpy as jnp
from jax.experimental import pallas as pl
from jax.experimental.pallas import tpu as pltpu

_LANES = 128             # vreg lane width; every store is lane-dense
_MAX_TILE_ROWS = 8192    # 8192 x 128 x 4 B = 4 MiB per output tile
_SMALL_N_THRESHOLD = 1 << 17   # below ~1e5 elements, plain jnp.full wins


def _variance_fill_kernel(var_ref, out_ref):
    # var_ref: SMEM, shape (1,), float32 -- the scalar `variance` parameter.
    # out_ref: VMEM, shape (tile_rows, 128), float32 -- filled with exp(10*variance).
    # exp is one scalar EUP op per grid step (loop-invariant, negligible).
    inv_s = jnp.exp(var_ref[0] * 10.0)
    out_ref[...] = jnp.full(out_ref.shape, inv_s, out_ref.dtype)


@functools.partial(jax.jit, static_argnames=("n",))
def _variance_fill_pallas(variance: jax.Array, n: int) -> jax.Array:
    """Materialize exp(variance*10) broadcast to shape (n, 1) via Pallas."""
    var = jnp.asarray(variance, dtype=jnp.float32).reshape((1,))

    # Lane-dense slab: n elements laid out as (rows, 128). Balance the tile size
    # so the grid-step count is minimal and tile-multiple padding stays tiny.
    rows_needed = pl.cdiv(n, _LANES)
    num_tiles = pl.cdiv(rows_needed, _MAX_TILE_ROWS)
    tile_rows = ((pl.cdiv(rows_needed, num_tiles) + 7) // 8) * 8  # mult. of 8 sublanes
    rows_padded = num_tiles * tile_rows

    slab = pl.pallas_call(
        _variance_fill_kernel,
        out_shape=jax.ShapeDtypeStruct((rows_padded, _LANES), jnp.float32),
        grid=(num_tiles,),
        in_specs=[pl.BlockSpec(memory_space=pltpu.SMEM)],
        out_specs=pl.BlockSpec((tile_rows, _LANES), lambda i: (i, 0)),
        compiler_params=pltpu.CompilerParams(
            dimension_semantics=("parallel",),      # shard rows across TCs on v7x
            vmem_limit_bytes=32 * 1024 * 1024,      # >= 2x tile bytes + slack, all gens
        ),
    )(var)

    # Row-major reshape is a bitcast. Padded tail elements hold the same valid
    # constant, so slicing is only needed when n is not the exact slab size.
    flat = slab.reshape(rows_padded * _LANES, 1)
    if rows_padded * _LANES == n:
        return flat
    return flat[:n]


def variance_network_forward(x: jax.Array, variance: jax.Array,
                             force_pallas: bool = False) -> jax.Array:
    """Pallas equivalent of VarianceNetwork.forward(x).

    x:        [N, ...] array (only N is used, matching `torch.ones([len(x), 1])`).
    variance: scalar (shape () or (1,)) float32 parameter.
    returns:  [N, 1] float32 filled with exp(variance * 10.0).
    """
    n = x.shape[0]
    if not force_pallas and n < _SMALL_N_THRESHOLD:
        # Small-N fast path: single fused broadcast, one HBM write, no custom-call
        # overhead. (Best of all: fuse exp(10*variance) into the consumer.)
        v = jnp.asarray(variance, dtype=jnp.float32).reshape(())
        return jnp.full((n, 1), jnp.exp(v * 10.0), dtype=jnp.float32)
    return _variance_fill_pallas(variance, n)


if __name__ == "__main__":
    key = jax.random.PRNGKey(0)

    # Deterministic "config": init_val = 0.3 (a typical NeuS setting).
    init_val = 0.3
    variance = jnp.asarray(init_val, dtype=jnp.float32)  # the nn.Parameter

    def ref_forward(x):
        return jnp.ones((x.shape[0], 1), jnp.float32) * jnp.exp(variance * 10.0)

    # Case 1: small input (N=16, D=3), Pallas path forced so the kernel runs.
    x_small = jax.random.normal(key, (16, 3), dtype=jnp.float32)
    out_small = jax.block_until_ready(
        variance_network_forward(x_small, variance, force_pallas=True))
    assert out_small.shape == (16, 1) and out_small.dtype == jnp.float32
    assert jnp.allclose(out_small, ref_forward(x_small), rtol=1e-6, atol=1e-6)

    # Case 2: N not a multiple of 128 (exercises the padded-slab slice path).
    x_odd = jax.random.normal(key, (1000, 3), dtype=jnp.float32)
    out_odd = jax.block_until_ready(
        variance_network_forward(x_odd, variance, force_pallas=True))
    assert out_odd.shape == (1000, 1)
    assert jnp.allclose(out_odd, ref_forward(x_odd), rtol=1e-6, atol=1e-6)

    # Case 3: default dispatch (small-N fast path, no pallas_call).
    out_fast = jax.block_until_ready(variance_network_forward(x_small, variance))
    assert out_fast.shape == (16, 1)
    assert jnp.allclose(out_fast, ref_forward(x_small), rtol=1e-6, atol=1e-6)

    # TODO(synk): training-time modulate/clamp (update_step / do_mod) is host-side
    # state logic with no kernel equivalent; only the plain forward is implemented.

    print("KERNEL_OK")
</pallas_src>

<mosaic_0001>
module attributes {stable_mosaic.version = 11 : i64} {
  func.func @_variance_fill_kernel(%arg0: i32, %arg1: memref<1xf32, #tpu.memory_space<smem>>, %arg2: memref<8x128xf32, #tpu.memory_space<vmem>>) attributes {dimension_semantics = [#tpu.dimension_semantics<parallel>], iteration_bounds = array<i64: 1>, scalar_prefetch = 0 : i64, scratch_operands = 0 : i64, tpu.core_type = #tpu.core_type<tc>, window_params = [{transform_indices = @transform_0, window_bounds = array<i64: 1>}, {transform_indices = @transform_1, window_bounds = array<i64: 8, 128>}]} {
    %c0 = arith.constant 0 : index
    %0 = memref.load %arg1[%c0] : memref<1xf32, #tpu.memory_space<smem>>
    %cst = arith.constant 1.000000e+01 : f32
    %1 = arith.mulf %0, %cst : f32
    %2 = math.exp %1 : f32
    %3 = vector.broadcast %2 : f32 to vector<8x128xf32>
    %c0_0 = arith.constant 0 : index
    %c0_1 = arith.constant 0 : index
    %4 = vector.load %arg2[%c0_0, %c0_1] : memref<8x128xf32, #tpu.memory_space<vmem>>, vector<8x128xf32>
    tpu.vector_store %arg2[%c0_0, %c0_1], %3 {strides = array<i32>} : memref<8x128xf32, #tpu.memory_space<vmem>>, vector<8x128xf32>,
    return
  }
  func.func @transform_0(%arg0: i32) -> i32 {
    %c0_i32 = arith.constant 0 : i32
    %c0_i32_0 = arith.constant 0 : i32
    return %c0_i32 : i32
  }
  func.func @transform_1(%arg0: i32) -> (i32, i32) {
    %c0_i32 = arith.constant 0 : i32
    %c0_i32_0 = arith.constant 0 : i32
    return %arg0, %c0_i32 : i32, i32
  }
}

</mosaic_0001>

<bundles_post_ra>
// kernel: _variance_fill_pallas.1
= control target key start
LH: loop header
LB: loop body
LE: loop exit
PB: predicated region body
PF: predicated region fallthrough
CT: control target
= control target key end

     0   :  { %s41_s0 = inlined_call_operand.<no memory space> [shape: f32[1], index: 0, kind: input, shape index: {}]   ;;  %s42_s1 = inlined_call_operand.vmem [shape: f32[8,128], index: 1, kind: output, shape index: {}]  }
   0x1   :  { %s10_s8 = smul.f32 10.0, %s41_s0 }
   0x3   :  { %v11_v0 = vstv %s10_s8 }
   0x4   :  { %v12_v1 = vmul.f32 1.442695, %v11_v0 }
   0x6   :  { %23 = vpow2.f32 %v12_v1 }
  0x10   :  { %v24_v2 = vpop.eup %23 }
  0x11   :  { %21 = vpush %v24_v2 }
  0x42   :  { %s22_s9 = spop %21 }
  0x43   :  { %v15_v3 = vstv %s22_s9 }
  0x44   :  { %16 = vst [vmem:[%s42_s1] sm:$0xff] %v15_v3 }

</bundles_post_ra>
